<compile_context>
chip_gen: v5e
topology: v5e:2x2
jax: 0.10.0
libtpu: 0.0.40
codegen_flags: <defaults>
</compile_context>

<pallas_src>
import functools

import jax
import jax.numpy as jnp
from jax import lax
from jax.experimental import pallas as pl
from jax.experimental.pallas import tpu as pltpu


# ---------------------------------------------------------------------------
# Stage 1: fused QKV projection, tiled over sequence, head-split outputs.
# ---------------------------------------------------------------------------
def qkv_proj_kernel(emb_ref, wqkv_ref, bqkv_ref, q_ref, k_ref, v_ref, *,
                    inv_scale):
    cdt = q_ref.dtype                             # compute dtype (bf16 or f32)
    num_heads, _, head_dim = q_ref.shape
    emb_dim = emb_ref.shape[1]

    x = emb_ref[...].astype(cdt)                  # (tq, E)
    # One wide MXU contraction for Q, K and V; f32 accumulation, f32 bias add.
    qkv = jnp.dot(x, wqkv_ref[...],
                  preferred_element_type=jnp.float32) + bqkv_ref[...]  # (tq, 3E)

    # Static lane slices -> head-split (H, tq, D) outputs; scale folded into Q.
    for h in range(num_heads):
        base = h * head_dim
        q_ref[h] = (qkv[:, base:base + head_dim] * inv_scale).astype(cdt)
        k_ref[h] = qkv[:, emb_dim + base: emb_dim + base + head_dim].astype(cdt)
        v_ref[h] = qkv[:, 2 * emb_dim + base: 2 * emb_dim + base + head_dim].astype(cdt)


# ---------------------------------------------------------------------------
# Stage 2: causal flash attention (heads batched) + fused feed-forward.
# grid = (num_q_tiles, num_kv_tiles); kv axis is the sequential reduction.
# Requires q_tile == kv_tile so the diagonal block is ki == qi.
# ---------------------------------------------------------------------------
def attn_ffn_kernel(q_ref, k_ref, v_ref, w1_ref, b1_ref, w2_ref, b2_ref,
                    out_ref, m_ref, l_ref, acc_ref):
    cdt = q_ref.dtype
    num_heads, tq, _ = q_ref.shape
    tkv = k_ref.shape[1]

    qi = pl.program_id(0)
    ki = pl.program_id(1)

    @pl.when(ki == 0)
    def _init():
        m_ref[...] = jnp.full(m_ref.shape, -jnp.inf, m_ref.dtype)
        l_ref[...] = jnp.zeros(l_ref.shape, l_ref.dtype)
        acc_ref[...] = jnp.zeros(acc_ref.shape, acc_ref.dtype)

    def scores():
        # Batched over heads -> full MXU contraction, no per-head loop.
        return jnp.einsum("hqd,hkd->hqk", q_ref[...], k_ref[...],
                          preferred_element_type=jnp.float32)   # (H, tq, tkv) f32

    def online_softmax_update(s):
        m_prev = m_ref[...]
        m_new = jnp.maximum(m_prev, jnp.max(s, axis=-1, keepdims=True))
        alpha = jnp.exp(m_prev - m_new)
        p = jnp.exp(s - m_new)
        l_ref[...] = alpha * l_ref[...] + jnp.sum(p, axis=-1, keepdims=True)
        acc_ref[...] = alpha * acc_ref[...] + jnp.einsum(
            "hqk,hkd->hqd", p.astype(cdt), v_ref[...],
            preferred_element_type=jnp.float32)
        m_ref[...] = m_new

    # Interior blocks (fully below the diagonal): no mask work at all.
    @pl.when(ki < qi)
    def _interior():
        online_softmax_update(scores())

    # Diagonal block: masked, and it is the *last* block this q tile needs,
    # so the softmax finalize + fused feed-forward run here too.  Later kv
    # steps for this q tile do nothing and (via the clamped K/V index_map)
    # issue no new DMA.
    @pl.when(ki == qi)
    def _diagonal():
        s = scores()
        # Same tile size on q and kv => local row/col indices suffice.
        row = lax.broadcasted_iota(jnp.int32, (tq, tkv), 0)
        col = lax.broadcasted_iota(jnp.int32, (tq, tkv), 1)
        s = s + jnp.where(col > row, jnp.float32(-1e9), jnp.float32(0.0))[None]
        online_softmax_update(s)

        # ----- finalize: normalize, merge heads, fused FFN ------------------
        approx = cdt != jnp.float32      # EUP approx reciprocal on bf16 path
        inv_l = pl.reciprocal(l_ref[...], approx=approx)
        attn = acc_ref[...] * inv_l                           # (H, tq, D) f32

        # Head merge (== transpose(0,1).view(seq,-1)); once per q tile.
        # TODO(synk): replace lane-concat with a lane-aware einshape merge.
        attn2d = jnp.concatenate([attn[h] for h in range(num_heads)],
                                 axis=-1).astype(cdt)          # (tq, E)

        hidden = jnp.dot(attn2d, w1_ref[...],
                         preferred_element_type=jnp.float32) + b1_ref[...]
        hidden = jnp.maximum(hidden, 0.0).astype(cdt)
        out = jnp.dot(hidden, w2_ref[...],
                      preferred_element_type=jnp.float32) + b2_ref[...]
        out_ref[...] = out.astype(out_ref.dtype)


# ---------------------------------------------------------------------------
# Wrapper
# ---------------------------------------------------------------------------
def _seq_tile(seq_len, target):
    """Largest tile <= target that divides seq_len (full extent if small)."""
    if seq_len <= target:
        return seq_len
    tile = target
    while seq_len % tile != 0:
        tile //= 2
    return tile


def multi_head_attention_forward(emb, params, num_heads, *,
                                 compute_dtype=jnp.bfloat16,
                                 seq_tile=256):
    seq_len, emb_dim = emb.shape
    assert emb_dim % num_heads == 0
    head_dim = emb_dim // num_heads
    hidden_ff = params["w1"].shape[1]
    inv_scale = 1.0 / (head_dim ** 0.5)

    # One tile size for q and kv so the diagonal kv block index == q block index.
    t = _seq_tile(seq_len, seq_tile)
    n_tiles = seq_len // t

    # Pre-cast / pre-fuse weights in the wrapper: halves weight DMA bytes and
    # VMEM residency, removes per-step f32->bf16 converts inside the kernels.
    wqkv = jnp.concatenate([params["wq"], params["wk"], params["wv"]],
                           axis=1).astype(compute_dtype)          # (E, 3E)
    bqkv = jnp.concatenate([params["bq"], params["bk"], params["bv"]],
                           axis=1)                                # (1, 3E) f32
    w1 = params["w1"].astype(compute_dtype)
    w2 = params["w2"].astype(compute_dtype)
    b1 = params["b1"]                                             # f32
    b2 = params["b2"]                                             # f32

    # 48 MiB: within v7x's 64 MiB/TC physical VMEM, comfortable on v5e/v6e.
    vmem_limit = 48 * 1024 * 1024

    # --- Stage 1: fused QKV projection, head-split (H, S, D) outputs. --------
    qkv_out_spec = pl.BlockSpec((num_heads, t, head_dim), lambda i: (0, i, 0))
    q, k, v = pl.pallas_call(
        functools.partial(qkv_proj_kernel, inv_scale=inv_scale),
        out_shape=tuple(
            jax.ShapeDtypeStruct((num_heads, seq_len, head_dim), compute_dtype)
            for _ in range(3)),
        grid_spec=pltpu.PrefetchScalarGridSpec(
            num_scalar_prefetch=0,
            grid=(n_tiles,),
            in_specs=[
                pl.BlockSpec((t, emb_dim), lambda i: (i, 0)),          # emb tile
                pl.BlockSpec((emb_dim, 3 * emb_dim), lambda i: (0, 0)),  # wqkv
                pl.BlockSpec((1, 3 * emb_dim), lambda i: (0, 0)),        # bqkv
            ],
            out_specs=(qkv_out_spec, qkv_out_spec, qkv_out_spec),
        ),
        compiler_params=pltpu.CompilerParams(
            dimension_semantics=("parallel",),
            vmem_limit_bytes=vmem_limit),
    )(emb, wqkv, bqkv)

    # --- Stage 2: causal flash attention + fused FFN. ------------------------
    # K/V index_map clamped to the diagonal block: steps past the diagonal
    # reuse the resident block -> no DMA for causally-masked kv blocks.
    kv_spec = pl.BlockSpec((num_heads, t, head_dim),
                           lambda i, j: (0, jnp.minimum(j, i), 0))
    out = pl.pallas_call(
        attn_ffn_kernel,
        out_shape=jax.ShapeDtypeStruct((seq_len, emb_dim), compute_dtype),
        grid_spec=pltpu.PrefetchScalarGridSpec(
            num_scalar_prefetch=0,
            grid=(n_tiles, n_tiles),
            in_specs=[
                pl.BlockSpec((num_heads, t, head_dim), lambda i, j: (0, i, 0)),
                kv_spec,                                             # K
                kv_spec,                                             # V
                pl.BlockSpec((emb_dim, hidden_ff), lambda i, j: (0, 0)),  # w1
                pl.BlockSpec((1, hidden_ff), lambda i, j: (0, 0)),        # b1
                pl.BlockSpec((hidden_ff, emb_dim), lambda i, j: (0, 0)),  # w2
                pl.BlockSpec((1, emb_dim), lambda i, j: (0, 0)),          # b2
            ],
            out_specs=pl.BlockSpec((t, emb_dim), lambda i, j: (i, 0)),
            scratch_shapes=[
                pltpu.VMEM((num_heads, t, 1), jnp.float32),           # running max
                pltpu.VMEM((num_heads, t, 1), jnp.float32),           # running sum
                pltpu.VMEM((num_heads, t, head_dim), jnp.float32),    # accumulator
            ],
        ),
        compiler_params=pltpu.CompilerParams(
            dimension_semantics=("parallel", "arbitrary"),
            vmem_limit_bytes=vmem_limit),
    )(q, k, v, w1, b1, w2, b2)
    return out


# ---------------------------------------------------------------------------
# Parameters & pure-JAX reference
# ---------------------------------------------------------------------------
def init_params(key, emb_dim, hidden_dim_ff):
    ks = jax.random.split(key, 10)
    se = 1.0 / (emb_dim ** 0.5)
    sh = 1.0 / (hidden_dim_ff ** 0.5)
    u = jax.random.uniform
    return {
        # weights stored as (in, out) == W^T of the PyTorch Linear
        "wq": u(ks[0], (emb_dim, emb_dim), jnp.float32, -se, se),
        "bq": u(ks[1], (1, emb_dim), jnp.float32, -se, se),
        "wk": u(ks[2], (emb_dim, emb_dim), jnp.float32, -se, se),
        "bk": u(ks[3], (1, emb_dim), jnp.float32, -se, se),
        "wv": u(ks[4], (emb_dim, emb_dim), jnp.float32, -se, se),
        "bv": u(ks[5], (1, emb_dim), jnp.float32, -se, se),
        "w1": u(ks[6], (emb_dim, hidden_dim_ff), jnp.float32, -se, se),
        "b1": u(ks[7], (1, hidden_dim_ff), jnp.float32, -se, se),
        "w2": u(ks[8], (hidden_dim_ff, emb_dim), jnp.float32, -sh, sh),
        "b2": u(ks[9], (1, emb_dim), jnp.float32, -sh, sh),
        # present in the PyTorch module's __init__ but never used in forward()
        "attn_embedding_bias": jnp.zeros((emb_dim,), jnp.float32),
    }


def reference_forward(emb, params, num_heads):
    """Pure-JAX reference matching the PyTorch forward exactly (f32)."""
    seq_len, emb_dim = emb.shape
    head_dim = emb_dim // num_heads
    def proj(w, b):
        return (emb @ w + b).reshape(seq_len, num_heads, head_dim).transpose(1, 0, 2)
    q = proj(params["wq"], params["bq"])
    k = proj(params["wk"], params["bk"])
    v = proj(params["wv"], params["bv"])
    scores = jnp.einsum("hqd,hkd->hqk", q, k) / (head_dim ** 0.5)
    mask = jnp.triu(jnp.ones_like(scores), k=1) * -1e9
    p = jax.nn.softmax(scores + mask, axis=-1)
    attn = jnp.einsum("hqk,hkd->hqd", p, v).transpose(1, 0, 2).reshape(seq_len, -1)
    hidden = jnp.maximum(attn @ params["w1"] + params["b1"], 0.0)
    return hidden @ params["w2"] + params["b2"]


def _run_case(key, seq_len, emb_dim, num_heads, hidden_ff, seq_tile):
    k_emb, k_param = jax.random.split(key)
    emb = jax.random.normal(k_emb, (seq_len, emb_dim), jnp.float32)
    params = init_params(k_param, emb_dim, hidden_ff)
    ref = reference_forward(emb, params, num_heads)

    # Performance path: bf16 MXU inputs, f32 accumulation/softmax statistics.
    out_bf16 = multi_head_attention_forward(
        emb, params, num_heads, compute_dtype=jnp.bfloat16, seq_tile=seq_tile)
    out_bf16 = jax.block_until_ready(out_bf16)
    assert out_bf16.shape == (seq_len, emb_dim)
    assert jnp.allclose(out_bf16.astype(jnp.float32), ref, atol=5e-2, rtol=5e-2), \
        f"bf16 mismatch @ seq={seq_len} emb={emb_dim}"

    # Full-precision path: tight check of forward-pass semantics.
    out_f32 = multi_head_attention_forward(
        emb, params, num_heads, compute_dtype=jnp.float32, seq_tile=seq_tile)
    out_f32 = jax.block_until_ready(out_f32)
    assert jnp.allclose(out_f32, ref, atol=5e-4, rtol=5e-4), \
        f"f32 mismatch @ seq={seq_len} emb={emb_dim}"


if __name__ == "__main__":
    root = jax.random.PRNGKey(0)
    k1, k2 = jax.random.split(root)

    # Small shapes consistent with the module (single-tile path).
    _run_case(k1, seq_len=8, emb_dim=32, num_heads=4, hidden_ff=64, seq_tile=256)

    # Slightly larger case exercising the multi-tile causal grid
    # (interior/diagonal branches, clamped K/V index_map, early finalize).
    _run_case(k2, seq_len=256, emb_dim=128, num_heads=4, hidden_ff=256, seq_tile=64)

    print("KERNEL_OK")
</pallas_src>

<mosaic_0001>
module attributes {stable_mosaic.version = 11 : i64} {
  func.func @qkv_proj_kernel(%arg0: i32, %arg1: memref<8x32xf32, #tpu.memory_space<vmem>>, %arg2: memref<32x96xbf16, #tpu.memory_space<vmem>>, %arg3: memref<1x96xf32, #tpu.memory_space<vmem>>, %arg4: memref<4x8x8xbf16, #tpu.memory_space<vmem>>, %arg5: memref<4x8x8xbf16, #tpu.memory_space<vmem>>, %arg6: memref<4x8x8xbf16, #tpu.memory_space<vmem>>) attributes {dimension_semantics = [#tpu.dimension_semantics<parallel>], iteration_bounds = array<i64: 1>, scalar_prefetch = 0 : i64, scratch_operands = 0 : i64, tpu.core_type = #tpu.core_type<tc>, window_params = [{transform_indices = @transform_0, window_bounds = array<i64: 8, 32>}, {pipeline_mode = #tpu.pipeline_mode<synchronous>, transform_indices = @transform_1, window_bounds = array<i64: 32, 96>}, {pipeline_mode = #tpu.pipeline_mode<synchronous>, transform_indices = @transform_2, window_bounds = array<i64: 1, 96>}, {transform_indices = @transform_3, window_bounds = array<i64: 4, 8, 8>}, {transform_indices = @transform_4, window_bounds = array<i64: 4, 8, 8>}, {transform_indices = @transform_5, window_bounds = array<i64: 4, 8, 8>}]} {
    %c0 = arith.constant 0 : index
    %c0_0 = arith.constant 0 : index
    %0 = vector.load %arg1[%c0, %c0_0] : memref<8x32xf32, #tpu.memory_space<vmem>>, vector<8x32xf32>
    %1 = arith.truncf %0 : vector<8x32xf32> to vector<8x32xbf16>
    %c0_1 = arith.constant 0 : index
    %c0_2 = arith.constant 0 : index
    %2 = vector.load %arg2[%c0_1, %c0_2] : memref<32x96xbf16, #tpu.memory_space<vmem>>, vector<32x96xbf16>
    %cst = arith.constant dense<0.000000e+00> : vector<8x96xf32>
    %3 = tpu.matmul %1, %2, %cst {dimension_numbers = #tpu.dot_dimension_numbers<[1], [0], [0], [1], [0, 0, 1, 1], [], []>} : vector<8x32xbf16>, vector<32x96xbf16>, vector<8x96xf32> -> vector<8x96xf32>
    %c0_3 = arith.constant 0 : index
    %c0_4 = arith.constant 0 : index
    %4 = vector.load %arg3[%c0_3, %c0_4] : memref<1x96xf32, #tpu.memory_space<vmem>>, vector<1x96xf32>
    %5 = vector.broadcast %4 : vector<1x96xf32> to vector<8x96xf32>
    %6 = arith.addf %3, %5 : vector<8x96xf32>
    %7 = vector.extract_strided_slice %6 {offsets = [0, 0], sizes = [8, 8], strides = [1, 1]} : vector<8x96xf32> to vector<8x8xf32>
    %cst_5 = arith.constant 0.353553385 : f32
    %8 = vector.broadcast %cst_5 : f32 to vector<8x8xf32>
    %9 = arith.mulf %7, %8 : vector<8x8xf32>
    %10 = arith.truncf %9 : vector<8x8xf32> to vector<8x8xbf16>
    %c0_6 = arith.constant 0 : index
    %c0_7 = arith.constant 0 : index
    %c0_8 = arith.constant 0 : index
    %11 = vector.load %arg4[%c0_6, %c0_7, %c0_8] : memref<4x8x8xbf16, #tpu.memory_space<vmem>>, vector<1x8x8xbf16>
    %12 = vector.shape_cast %11 : vector<1x8x8xbf16> to vector<8x8xbf16>
    %13 = vector.shape_cast %10 : vector<8x8xbf16> to vector<1x8x8xbf16>
    tpu.vector_store %arg4[%c0_6, %c0_7, %c0_8], %13 {strides = array<i32>} : memref<4x8x8xbf16, #tpu.memory_space<vmem>>, vector<1x8x8xbf16>,
    %14 = vector.extract_strided_slice %6 {offsets = [0, 32], sizes = [8, 8], strides = [1, 1]} : vector<8x96xf32> to vector<8x8xf32>
    %15 = arith.truncf %14 : vector<8x8xf32> to vector<8x8xbf16>
    %c0_9 = arith.constant 0 : index
    %c0_10 = arith.constant 0 : index
    %c0_11 = arith.constant 0 : index
    %16 = vector.load %arg5[%c0_9, %c0_10, %c0_11] : memref<4x8x8xbf16, #tpu.memory_space<vmem>>, vector<1x8x8xbf16>
    %17 = vector.shape_cast %16 : vector<1x8x8xbf16> to vector<8x8xbf16>
    %18 = vector.shape_cast %15 : vector<8x8xbf16> to vector<1x8x8xbf16>
    tpu.vector_store %arg5[%c0_9, %c0_10, %c0_11], %18 {strides = array<i32>} : memref<4x8x8xbf16, #tpu.memory_space<vmem>>, vector<1x8x8xbf16>,
    %19 = vector.extract_strided_slice %6 {offsets = [0, 64], sizes = [8, 8], strides = [1, 1]} : vector<8x96xf32> to vector<8x8xf32>
    %20 = arith.truncf %19 : vector<8x8xf32> to vector<8x8xbf16>
    %c0_12 = arith.constant 0 : index
    %c0_13 = arith.constant 0 : index
    %c0_14 = arith.constant 0 : index
    %21 = vector.load %arg6[%c0_12, %c0_13, %c0_14] : memref<4x8x8xbf16, #tpu.memory_space<vmem>>, vector<1x8x8xbf16>
    %22 = vector.shape_cast %21 : vector<1x8x8xbf16> to vector<8x8xbf16>
    %23 = vector.shape_cast %20 : vector<8x8xbf16> to vector<1x8x8xbf16>
    tpu.vector_store %arg6[%c0_12, %c0_13, %c0_14], %23 {strides = array<i32>} : memref<4x8x8xbf16, #tpu.memory_space<vmem>>, vector<1x8x8xbf16>,
    %24 = vector.extract_strided_slice %6 {offsets = [0, 8], sizes = [8, 8], strides = [1, 1]} : vector<8x96xf32> to vector<8x8xf32>
    %cst_15 = arith.constant 0.353553385 : f32
    %25 = vector.broadcast %cst_15 : f32 to vector<8x8xf32>
    %26 = arith.mulf %24, %25 : vector<8x8xf32>
    %27 = arith.truncf %26 : vector<8x8xf32> to vector<8x8xbf16>
    %c1 = arith.constant 1 : index
    %c0_16 = arith.constant 0 : index
    %c0_17 = arith.constant 0 : index
    %28 = vector.load %arg4[%c1, %c0_16, %c0_17] : memref<4x8x8xbf16, #tpu.memory_space<vmem>>, vector<1x8x8xbf16>
    %29 = vector.shape_cast %28 : vector<1x8x8xbf16> to vector<8x8xbf16>
    %30 = vector.shape_cast %27 : vector<8x8xbf16> to vector<1x8x8xbf16>
    tpu.vector_store %arg4[%c1, %c0_16, %c0_17], %30 {strides = array<i32>} : memref<4x8x8xbf16, #tpu.memory_space<vmem>>, vector<1x8x8xbf16>,
    %31 = vector.extract_strided_slice %6 {offsets = [0, 40], sizes = [8, 8], strides = [1, 1]} : vector<8x96xf32> to vector<8x8xf32>
    %32 = arith.truncf %31 : vector<8x8xf32> to vector<8x8xbf16>
    %c1_18 = arith.constant 1 : index
    %c0_19 = arith.constant 0 : index
    %c0_20 = arith.constant 0 : index
    %33 = vector.load %arg5[%c1_18, %c0_19, %c0_20] : memref<4x8x8xbf16, #tpu.memory_space<vmem>>, vector<1x8x8xbf16>
    %34 = vector.shape_cast %33 : vector<1x8x8xbf16> to vector<8x8xbf16>
    %35 = vector.shape_cast %32 : vector<8x8xbf16> to vector<1x8x8xbf16>
    tpu.vector_store %arg5[%c1_18, %c0_19, %c0_20], %35 {strides = array<i32>} : memref<4x8x8xbf16, #tpu.memory_space<vmem>>, vector<1x8x8xbf16>,
    %36 = vector.extract_strided_slice %6 {offsets = [0, 72], sizes = [8, 8], strides = [1, 1]} : vector<8x96xf32> to vector<8x8xf32>
    %37 = arith.truncf %36 : vector<8x8xf32> to vector<8x8xbf16>
    %c1_21 = arith.constant 1 : index
    %c0_22 = arith.constant 0 : index
    %c0_23 = arith.constant 0 : index
    %38 = vector.load %arg6[%c1_21, %c0_22, %c0_23] : memref<4x8x8xbf16, #tpu.memory_space<vmem>>, vector<1x8x8xbf16>
    %39 = vector.shape_cast %38 : vector<1x8x8xbf16> to vector<8x8xbf16>
    %40 = vector.shape_cast %37 : vector<8x8xbf16> to vector<1x8x8xbf16>
    tpu.vector_store %arg6[%c1_21, %c0_22, %c0_23], %40 {strides = array<i32>} : memref<4x8x8xbf16, #tpu.memory_space<vmem>>, vector<1x8x8xbf16>,
    %41 = vector.extract_strided_slice %6 {offsets = [0, 16], sizes = [8, 8], strides = [1, 1]} : vector<8x96xf32> to vector<8x8xf32>
    %cst_24 = arith.constant 0.353553385 : f32
    %42 = vector.broadcast %cst_24 : f32 to vector<8x8xf32>
    %43 = arith.mulf %41, %42 : vector<8x8xf32>
    %44 = arith.truncf %43 : vector<8x8xf32> to vector<8x8xbf16>
    %c2 = arith.constant 2 : index
    %c0_25 = arith.constant 0 : index
    %c0_26 = arith.constant 0 : index
    %45 = vector.load %arg4[%c2, %c0_25, %c0_26] : memref<4x8x8xbf16, #tpu.memory_space<vmem>>, vector<1x8x8xbf16>
    %46 = vector.shape_cast %45 : vector<1x8x8xbf16> to vector<8x8xbf16>
    %47 = vector.shape_cast %44 : vector<8x8xbf16> to vector<1x8x8xbf16>
    tpu.vector_store %arg4[%c2, %c0_25, %c0_26], %47 {strides = array<i32>} : memref<4x8x8xbf16, #tpu.memory_space<vmem>>, vector<1x8x8xbf16>,
    %48 = vector.extract_strided_slice %6 {offsets = [0, 48], sizes = [8, 8], strides = [1, 1]} : vector<8x96xf32> to vector<8x8xf32>
    %49 = arith.truncf %48 : vector<8x8xf32> to vector<8x8xbf16>
    %c2_27 = arith.constant 2 : index
    %c0_28 = arith.constant 0 : index
    %c0_29 = arith.constant 0 : index
    %50 = vector.load %arg5[%c2_27, %c0_28, %c0_29] : memref<4x8x8xbf16, #tpu.memory_space<vmem>>, vector<1x8x8xbf16>
    %51 = vector.shape_cast %50 : vector<1x8x8xbf16> to vector<8x8xbf16>
    %52 = vector.shape_cast %49 : vector<8x8xbf16> to vector<1x8x8xbf16>
    tpu.vector_store %arg5[%c2_27, %c0_28, %c0_29], %52 {strides = array<i32>} : memref<4x8x8xbf16, #tpu.memory_space<vmem>>, vector<1x8x8xbf16>,
    %53 = vector.extract_strided_slice %6 {offsets = [0, 80], sizes = [8, 8], strides = [1, 1]} : vector<8x96xf32> to vector<8x8xf32>
    %54 = arith.truncf %53 : vector<8x8xf32> to vector<8x8xbf16>
    %c2_30 = arith.constant 2 : index
    %c0_31 = arith.constant 0 : index
    %c0_32 = arith.constant 0 : index
    %55 = vector.load %arg6[%c2_30, %c0_31, %c0_32] : memref<4x8x8xbf16, #tpu.memory_space<vmem>>, vector<1x8x8xbf16>
    %56 = vector.shape_cast %55 : vector<1x8x8xbf16> to vector<8x8xbf16>
    %57 = vector.shape_cast %54 : vector<8x8xbf16> to vector<1x8x8xbf16>
    tpu.vector_store %arg6[%c2_30, %c0_31, %c0_32], %57 {strides = array<i32>} : memref<4x8x8xbf16, #tpu.memory_space<vmem>>, vector<1x8x8xbf16>,
    %58 = vector.extract_strided_slice %6 {offsets = [0, 24], sizes = [8, 8], strides = [1, 1]} : vector<8x96xf32> to vector<8x8xf32>
    %cst_33 = arith.constant 0.353553385 : f32
    %59 = vector.broadcast %cst_33 : f32 to vector<8x8xf32>
    %60 = arith.mulf %58, %59 : vector<8x8xf32>
    %61 = arith.truncf %60 : vector<8x8xf32> to vector<8x8xbf16>
    %c3 = arith.constant 3 : index
    %c0_34 = arith.constant 0 : index
    %c0_35 = arith.constant 0 : index
    %62 = vector.load %arg4[%c3, %c0_34, %c0_35] : memref<4x8x8xbf16, #tpu.memory_space<vmem>>, vector<1x8x8xbf16>
    %63 = vector.shape_cast %62 : vector<1x8x8xbf16> to vector<8x8xbf16>
    %64 = vector.shape_cast %61 : vector<8x8xbf16> to vector<1x8x8xbf16>
    tpu.vector_store %arg4[%c3, %c0_34, %c0_35], %64 {strides = array<i32>} : memref<4x8x8xbf16, #tpu.memory_space<vmem>>, vector<1x8x8xbf16>,
    %65 = vector.extract_strided_slice %6 {offsets = [0, 56], sizes = [8, 8], strides = [1, 1]} : vector<8x96xf32> to vector<8x8xf32>
    %66 = arith.truncf %65 : vector<8x8xf32> to vector<8x8xbf16>
    %c3_36 = arith.constant 3 : index
    %c0_37 = arith.constant 0 : index
    %c0_38 = arith.constant 0 : index
    %67 = vector.load %arg5[%c3_36, %c0_37, %c0_38] : memref<4x8x8xbf16, #tpu.memory_space<vmem>>, vector<1x8x8xbf16>
    %68 = vector.shape_cast %67 : vector<1x8x8xbf16> to vector<8x8xbf16>
    %69 = vector.shape_cast %66 : vector<8x8xbf16> to vector<1x8x8xbf16>
    tpu.vector_store %arg5[%c3_36, %c0_37, %c0_38], %69 {strides = array<i32>} : memref<4x8x8xbf16, #tpu.memory_space<vmem>>, vector<1x8x8xbf16>,
    %70 = vector.extract_strided_slice %6 {offsets = [0, 88], sizes = [8, 8], strides = [1, 1]} : vector<8x96xf32> to vector<8x8xf32>
    %71 = arith.truncf %70 : vector<8x8xf32> to vector<8x8xbf16>
    %c3_39 = arith.constant 3 : index
    %c0_40 = arith.constant 0 : index
    %c0_41 = arith.constant 0 : index
    %72 = vector.load %arg6[%c3_39, %c0_40, %c0_41] : memref<4x8x8xbf16, #tpu.memory_space<vmem>>, vector<1x8x8xbf16>
    %73 = vector.shape_cast %72 : vector<1x8x8xbf16> to vector<8x8xbf16>
    %74 = vector.shape_cast %71 : vector<8x8xbf16> to vector<1x8x8xbf16>
    tpu.vector_store %arg6[%c3_39, %c0_40, %c0_41], %74 {strides = array<i32>} : memref<4x8x8xbf16, #tpu.memory_space<vmem>>, vector<1x8x8xbf16>,
    return
  }
  func.func @transform_0(%arg0: i32) -> (i32, i32) {
    %c0_i32 = arith.constant 0 : i32
    %c0_i32_0 = arith.constant 0 : i32
    return %arg0, %c0_i32 : i32, i32
  }
  func.func @transform_1(%arg0: i32) -> (i32, i32) {
    %c0_i32 = arith.constant 0 : i32
    %c0_i32_0 = arith.constant 0 : i32
    %c0_i32_1 = arith.constant 0 : i32
    return %c0_i32, %c0_i32_0 : i32, i32
  }
  func.func @transform_2(%arg0: i32) -> (i32, i32) {
    %c0_i32 = arith.constant 0 : i32
    %c0_i32_0 = arith.constant 0 : i32
    %c0_i32_1 = arith.constant 0 : i32
    return %c0_i32, %c0_i32_0 : i32, i32
  }
  func.func @transform_3(%arg0: i32) -> (i32, i32, i32) {
    %c0_i32 = arith.constant 0 : i32
    %c0_i32_0 = arith.constant 0 : i32
    %c0_i32_1 = arith.constant 0 : i32
    return %c0_i32, %arg0, %c0_i32_0 : i32, i32, i32
  }
  func.func @transform_4(%arg0: i32) -> (i32, i32, i32) {
    %c0_i32 = arith.constant 0 : i32
    %c0_i32_0 = arith.constant 0 : i32
    %c0_i32_1 = arith.constant 0 : i32
    return %c0_i32, %arg0, %c0_i32_0 : i32, i32, i32
  }
  func.func @transform_5(%arg0: i32) -> (i32, i32, i32) {
    %c0_i32 = arith.constant 0 : i32
    %c0_i32_0 = arith.constant 0 : i32
    %c0_i32_1 = arith.constant 0 : i32
    return %c0_i32, %arg0, %c0_i32_0 : i32, i32, i32
  }
}

</mosaic_0001>

<bundles_post_ra>
// kernel: tpu_custom_call.1
= control target key start
LH: loop header
LB: loop body
LE: loop exit
PB: predicated region body
PF: predicated region fallthrough
CT: control target
= control target key end

     0   :  { %11 = vsyncpa [#allocation3], 0  ;;  %s451_s0 = inlined_call_operand.hbm [shape: f32[8,32], index: 0, kind: input, shape index: {}]   ;;  %s452_s1 = inlined_call_operand.hbm [shape: bf16[32,96], index: 1, kind: input, shape index: {}]   ;;  %s453_s2 = inlined_call_operand.vmem [shape: f32[1,96], index: 2, kind: input, shape index: {}]   ;;  %s454_s3 = inlined_call_operand.hbm [shape: bf16[4,8,8], index: 3, kind: output, shape index: {0}]   ;;  %s455_s4 = inlined_call_operand.hbm [shape: bf16[4,8,8], index: 4, kind: output, shape index: {1}]   ;;  %s456_s5 = inlined_call_operand.hbm [shape: bf16[4,8,8], index: 5, kind: output, shape index: {2}]  }
   0x1   :  { %12 = vsyncpa [#allocation6], 0 }
   0x2   :  { %13 = vsyncpa [#allocation4], 0 }
   0x3   :  { %14 = vsyncpa [#allocation9], 0  ;;  %s20_s20 = sshll.u32 %s451_s0, 4  ;;  %s361_s21 = smov [#allocation2]   ;;  %s21_s20 = int_to_ptr.hbm [resolvable:$true] %s20_s20 }
   0x4   :  { %s22_s22 = sshll.u32 %s361_s21, 4  ;;  %s30_s25 = sshll.u32 %s452_s1, 4  ;;  %s23_s22 = int_to_ptr.vmem [resolvable:$true] %s22_s22  ;;  %s31_s25 = int_to_ptr.hbm [resolvable:$true] %s30_s25 }
   0x5   :  { %25 = dma.hbm_to_vmem [thread:$0]  %s21_s20, 128, %s23_s22, [#allocation3]  }
   0x6   :  { %s362_s26 = smov [#allocation5]   ;;  %s363_s28 = smov 64  }
   0x7   :  { %s32_s27 = sshll.u32 %s362_s26, 4  ;;  %s364_s29 = smov 4   ;;  %s33_s27 = int_to_ptr.vmem [resolvable:$true] %s32_s27 }
   0x8   :  { %38 = dma.hbm_to_vmem [thread:$0]  %s31_s25, 256, %s33_s27, [#allocation6], %s363_s28, %s363_s28, %s364_s29  }
   0x9   :  { %353 = dma.done.wait [#allocation3], 128  }
   0xa   :  { %354 = vsyncadd [#allocation3], 4294967168 }
   0xb   :  { %355 = dma.done.wait [#allocation6], 256  }
   0xc   :  { %356 = vsyncadd [#allocation6], 4294967040  ;;  %v214_v0 = vld [vmem:[#allocation5 + $0x8] sm:$0xff]  ;;  %v213_v1 = vld [vmem:[#allocation5] sm:$0xff]  ;;  %vm72_vm0 = vcmask 261120   ;;  %vm91_vm1 = vcmask 60416  }
   0xd   :  { %82 = vmatpush.bf16.msra.mxu0 %v214_v0  ;;  %v50_v2 = vld [vmem:[#allocation2] sm:$0xff]  ;;  %s365_s30 = smov 80   ;;  %s366_s6 = smov 96  }
   0xe   :  { %v51_v3 = vpack.c.bf16 %v50_v2, %v50_v2  ;;  %v232_v4 = vld [vmem:[%s453_s2] ss:$0 sm:$0xff]  ;;  %s367_s7 = smov 72   ;;  %s368_s8 = smov 120  }
   0xf   :  { %s369_s2 = smov 88   ;;  %s370_s9 = smov 112  }
  0x10   :  { %s371_s10 = smov 48   ;;  %s372_s11 = smov 56  }
  0x11   :  { %83 = vmatpush.bf16.msra.mxu0 %v213_v1  ;;  %s373_s12 = smov 40   ;;  %s374_s13 = smov 104  }
  0x12   :  { %s375_s14 = smov [#allocation8]   ;;  %s168_s18 = sshll.u32 %s455_s4, 4  ;;  %s169_s18 = int_to_ptr.hbm [resolvable:$true] %s168_s18 }
  0x13   :  { %s166_s15 = sshll.u32 %s375_s14, 4  ;;  %s376_s19 = smov [#allocation10]   ;;  %s167_s15 = int_to_ptr.vmem [resolvable:$true] %s166_s15 }
  0x14   :  { %212 = vmatmul.msk.bf16.vlgmr.msra.gmra.mxu0 %vm72_vm0, %v51_v3  ;;  %s179_s4 = sshll.u32 %s376_s19, 4  ;;  %s181_s22 = sshll.u32 %s456_s5, 4  ;;  %s180_s4 = int_to_ptr.vmem [resolvable:$true] %s179_s4  ;;  %s182_s22 = int_to_ptr.hbm [resolvable:$true] %s181_s22 }
  0x15   :  { %s377_s23 = smov [#allocation7]   ;;  %s155_s27 = sshll.u32 %s454_s3, 4  ;;  %s156_s27 = int_to_ptr.hbm [resolvable:$true] %s155_s27 }
  0x16   :  { %s153_s24 = sshll.u32 %s377_s23, 4  ;;  %s154_s24 = int_to_ptr.vmem [resolvable:$true] %s153_s24 }
  0x91   :  { %v85_v5 = vpop.f32.mrf.mxu0 }
  0x92   :  { %v86_v6 = vadd.f32 %v232_v4, %v85_v5 }
  0x94   :  { %v89_v7 = vmul.f32 0.35355338, %v86_v6  ;;  %v93_v8 = vpack.c.bf16 %v86_v6, %v86_v6 }
  0x96   :  { %v90_v9 = vpack.c.bf16 %v89_v7, %v89_v7  ;;  %99 = vrot.lane.b32.xlu2 %v93_v8, %s363_s28  ;;  %124 = vrot.lane.b32.xlu1 %v93_v8, %s365_s30 }
  0x97   :  { %95 = vrot.lane.b32.xlu0 %v93_v8, %s366_s6 }
  0x98   :  { %92 = vst.msk [vmem:[#allocation7] sm:$0xf] %vm91_vm1, %v90_v9 }
  0x99   :  { %v87_v10 = vpop.f32.mrf.mxu0 }
  0x9e   :  { %139 = vrot.lane.b32.xlu1 %v93_v8, %s367_s7  ;;  %104 = vrot.lane.b32.xlu2 %v90_v9, %s368_s8 }
  0x9f   :  { %109 = vrot.lane.b32.xlu0 %v93_v8, %s369_s2 }
  0xa6   :  { %119 = vrot.lane.b32.xlu1 %v90_v9, %s370_s9  ;;  %129 = vrot.lane.b32.xlu2 %v93_v8, %s371_s10 }
  0xa7   :  { %114 = vrot.lane.b32.xlu0 %v93_v8, %s372_s11 }
  0xae   :  { %144 = vrot.lane.b32.xlu1 %v93_v8, %s373_s12 }
  0xaf   :  { %134 = vrot.lane.b32.xlu0 %v90_v9, %s374_s13 }
  0xf0   :  { %v100_v11 = vpop.permute.xlu2 %99 }
  0xf1   :  { %102 = vst.msk [vmem:[#allocation10] sm:$0xf] %vm91_vm1, %v100_v11 }
  0xf8   :  { %v105_v12 = vpop.permute.xlu2 %104 }
  0xf9   :  { %108 = vst.msk [vmem:[#allocation7 + $0x4] sm:$0xf] %vm91_vm1, %v105_v12 }
 0x100   :  { %v130_v13 = vpop.permute.xlu2 %129 }
 0x101   :  { %133 = vst.msk [vmem:[#allocation10 + $0x8] sm:$0xf] %vm91_vm1, %v130_v13 }
 0x108   :  { %v125_v14 = vpop.permute.xlu1 %124 }
 0x109   :  { %128 = vst.msk [vmem:[#allocation8 + $0x8] sm:$0xf] %vm91_vm1, %v125_v14  ;;  %v96_v15 = vpop.permute.xlu0 %95 }
 0x10a   :  { %98 = vst.msk [vmem:[#allocation8] sm:$0xf] %vm91_vm1, %v96_v15 }
 0x110   :  { %v140_v16 = vpop.permute.xlu1 %139 }
 0x111   :  { %143 = vst.msk [vmem:[#allocation8 + $0xc] sm:$0xf] %vm91_vm1, %v140_v16  ;;  %v110_v17 = vpop.permute.xlu0 %109 }
 0x112   :  { %113 = vst.msk [vmem:[#allocation8 + $0x4] sm:$0xf] %vm91_vm1, %v110_v17 }
 0x113   :  { %174 = dma.vmem_to_hbm [thread:$0]  %s167_s15, 256, %s169_s18, [#allocation9], %s363_s28, %s363_s28, %s364_s29  }
 0x118   :  { %v120_v18 = vpop.permute.xlu1 %119 }
 0x119   :  { %v115_v19 = vpop.permute.xlu0 %114  ;;  %123 = vst.msk [vmem:[#allocation7 + $0x8] sm:$0xf] %vm91_vm1, %v120_v18 }
 0x11a   :  { %118 = vst.msk [vmem:[#allocation10 + $0x4] sm:$0xf] %vm91_vm1, %v115_v19 }
 0x120   :  { %v145_v20 = vpop.permute.xlu1 %144 }
 0x121   :  { %v135_v21 = vpop.permute.xlu0 %134  ;;  %148 = vst.msk [vmem:[#allocation10 + $0xc] sm:$0xf] %vm91_vm1, %v145_v20 }
 0x122   :  { %138 = vst.msk [vmem:[#allocation7 + $0xc] sm:$0xf] %vm91_vm1, %v135_v21  ;;  %187 = dma.vmem_to_hbm [thread:$0]  %s180_s4, 256, %s182_s22, [#allocation9], %s363_s28, %s363_s28, %s364_s29  }
 0x123   :  { %161 = dma.vmem_to_hbm [thread:$0]  %s154_s24, 256, %s156_s27, [#allocation4], %s363_s28, %s363_s28, %s364_s29  }
 0x124   :  { %357 = dma.done.wait [#allocation4], 256  }
 0x125   :  { %358 = vsyncadd [#allocation4], 4294967040 }
 0x126   :  { %359 = dma.done.wait [#allocation9], 512  }
 0x127   :  { %360 = vsyncadd [#allocation9], 4294966784 }
 0x128   :  { %200 = vsyncpa [#allocation3], 1 }
 0x129   :  { %201 = vsyncpa [#allocation6], 1 }
 0x12a   :  { %202 = vsyncpa [#allocation4], 1 }
 0x12b   :  { %203 = vsyncpa [#allocation9], 1 }

</bundles_post_ra>
